<compile_context>
chip_gen: v6e
topology: v6e:2x2x1
jax: 0.10.0
libtpu: 0.0.40
codegen_flags: <defaults>
</compile_context>

<pallas_src>
import jax
import jax.numpy as jnp
from jax import lax
from jax.experimental import pallas as pl
from jax.experimental.pallas import tpu as pltpu

HIDDEN = 768
EPS = 1e-5  # PyTorch BatchNorm1d default eps


def _cdiv(a, b):
    return -(-a // b)


def _round_up(x, m):
    return ((x + m - 1) // m) * m


# ----------------------------------------------------------------------------
# Fused classifier-head kernel: in-kernel CLS-row gather + one bias-added matmul.
# ----------------------------------------------------------------------------
def _head_kernel(cls_ids_ref, emb_hbm, w_ref, b_ref, o_ref, x_vmem, gather_sem):
    # cls_ids_ref: SMEM [b_pad] int32 (scalar prefetch)
    # emb_hbm:     HBM ref [V, 768] f32 (memory_space=pl.ANY)
    # w_ref:       VMEM [768, 128] bf16 (BN-folded, fused heads)
    # b_ref:       VMEM [1, 128] f32
    # o_ref:       VMEM [tb, 128] f32
    # x_vmem:      VMEM scratch [tb, 768] f32
    # gather_sem:  DMA semaphore
    tb = x_vmem.shape[0]
    base = pl.program_id(0) * tb

    def _issue(r, carry):
        row = cls_ids_ref[base + r]
        pltpu.make_async_copy(emb_hbm.at[row], x_vmem.at[r], gather_sem).start()
        return carry

    lax.fori_loop(0, tb, _issue, 0)

    def _wait(r, carry):
        # Only the dst shape / semaphore matter for the wait.
        pltpu.make_async_copy(emb_hbm.at[0], x_vmem.at[r], gather_sem).wait()
        return carry

    lax.fori_loop(0, tb, _wait, 0)

    x = x_vmem[...].astype(jnp.bfloat16)  # bf16 operands -> native MXU rate
    o_ref[...] = (
        jnp.dot(x, w_ref[...], preferred_element_type=jnp.float32)
        + b_ref[...]
    )


def _choose_batch_tile(B):
    # Per-grid-step overhead ~0.35 us; bigger tiles track the HBM roofline
    # better.  For B > 256 use >= 2 tiles so both v7x TensorCores get work.
    if B > 256:
        nt = max(_cdiv(B, 1024), 2)
    else:
        nt = 1
    return _round_up(_cdiv(B, nt), 8)


def hierarchical_head(cls_ids, embedding, w_fused, b_fused,
                      num_categories, num_subcategories):
    """cls_ids: [B] int32 token ids of the CLS position.
    Returns (category_logits, subcategory_logits), both f32."""
    B = cls_ids.shape[0]
    V, H = embedding.shape
    n_pad = w_fused.shape[1]

    tb = _choose_batch_tile(B)
    b_pad = _round_up(B, tb)
    ids = cls_ids.astype(jnp.int32)
    if b_pad != B:
        ids = jnp.pad(ids, (0, b_pad - B))  # padded rows gather row 0 (valid)

    grid = (b_pad // tb,)

    out = pl.pallas_call(
        _head_kernel,
        out_shape=jax.ShapeDtypeStruct((b_pad, n_pad), jnp.float32),
        grid_spec=pltpu.PrefetchScalarGridSpec(
            num_scalar_prefetch=1,
            grid=grid,
            in_specs=[
                pl.BlockSpec(memory_space=pl.ANY),                  # embedding (HBM)
                pl.BlockSpec((H, n_pad), lambda i, ids: (0, 0)),    # fused weights
                pl.BlockSpec((1, n_pad), lambda i, ids: (0, 0)),    # fused bias
            ],
            out_specs=pl.BlockSpec((tb, n_pad), lambda i, ids: (i, 0)),
            scratch_shapes=[
                pltpu.VMEM((tb, H), embedding.dtype),   # gathered CLS rows
                pltpu.SemaphoreType.DMA(()),
            ],
        ),
        compiler_params=pltpu.CompilerParams(
            dimension_semantics=("parallel",),
        ),
    )(ids, embedding, w_fused, b_fused)

    nc, ns = num_categories, num_subcategories
    return out[:B, :nc], out[:B, nc:nc + ns]


# ----------------------------------------------------------------------------
# Parameter construction & one-time BN folding / head fusion.
# ----------------------------------------------------------------------------
def make_params(key, vocab_size, num_categories, num_subcategories):
    k_emb, k_wc, k_bc, k_ws, k_bs = jax.random.split(key, 5)
    return {
        # Stand-in "roberta" embedding table (deterministic).
        "embedding": 0.02 * jax.random.normal(
            k_emb, (vocab_size, HIDDEN), dtype=jnp.float32),
        # BatchNorm1d fresh-init state: gamma=1, beta=0, mean=0, var=1.
        "bn1": {"gamma": jnp.ones((1, HIDDEN), jnp.float32),
                "beta": jnp.zeros((1, HIDDEN), jnp.float32),
                "mean": jnp.zeros((1, HIDDEN), jnp.float32),
                "var": jnp.ones((1, HIDDEN), jnp.float32)},
        "bn2": {"gamma": jnp.ones((1, HIDDEN), jnp.float32),
                "beta": jnp.zeros((1, HIDDEN), jnp.float32),
                "mean": jnp.zeros((1, HIDDEN), jnp.float32),
                "var": jnp.ones((1, HIDDEN), jnp.float32)},
        # Linear heads stored transposed to [H, C].
        "wc": 0.02 * jax.random.normal(k_wc, (HIDDEN, num_categories), jnp.float32),
        "bc": 0.02 * jax.random.normal(k_bc, (1, num_categories), jnp.float32),
        "ws": 0.02 * jax.random.normal(k_ws, (HIDDEN, num_subcategories), jnp.float32),
        "bs": 0.02 * jax.random.normal(k_bs, (1, num_subcategories), jnp.float32),
    }


def prepare_inference_params(params, num_categories, num_subcategories):
    """One-time constant fold: BN -> weights, two heads -> one [768, 128] bf16 slab."""
    def fold(bn, w, b):
        scale = bn["gamma"] * jax.lax.rsqrt(bn["var"] + EPS)    # [1, H]
        shift = bn["beta"] - bn["mean"] * scale                 # [1, H]
        w_f = scale.reshape(-1, 1) * w                          # [H, C]
        b_f = shift @ w + b                                     # [1, C]
        return w_f, b_f

    wc_f, bc_f = fold(params["bn1"], params["wc"], params["bc"])
    ws_f, bs_f = fold(params["bn2"], params["ws"], params["bs"])

    nc, ns = num_categories, num_subcategories
    n_heads = nc + ns
    n_pad = _round_up(max(n_heads, 128), 128)   # lane-dense output width (keep 128)

    w_fused = jnp.zeros((HIDDEN, n_pad), jnp.float32)
    w_fused = w_fused.at[:, :nc].set(wc_f)
    w_fused = w_fused.at[:, nc:n_heads].set(ws_f)

    b_fused = jnp.zeros((1, n_pad), jnp.float32)
    b_fused = b_fused.at[:, :nc].set(bc_f)
    b_fused = b_fused.at[:, nc:n_heads].set(bs_f)

    return {
        "embedding": params["embedding"],                 # f32 (DMA row gather)
        "w_fused": w_fused.astype(jnp.bfloat16),          # halves weight DMA
        "b_fused": b_fused,                               # f32 bias / accumulator
        "num_categories": nc,
        "num_subcategories": ns,
    }


# ----------------------------------------------------------------------------
# Forward pass.
# ----------------------------------------------------------------------------
def forward(prep, input_ids, attention_mask):
    # TODO(synk): real RobertaModel forward not reproduced; the CLS-token id is
    # handed to the kernel, which gathers its embedding row directly from HBM
    # (matches `outputs.last_hidden_state[:, 0, :]` of the stand-in backbone
    # without materializing any [B, 768] buffer in HBM).
    del attention_mask  # consumed only by the real backbone
    cls_ids = input_ids[:, 0]

    # Dropout(p=0.3) in eval mode is the identity.
    return hierarchical_head(cls_ids,
                             prep["embedding"], prep["w_fused"], prep["b_fused"],
                             prep["num_categories"], prep["num_subcategories"])


def reference_forward(params, input_ids, attention_mask):
    """Pure-JAX reference using the unfolded BN + two-head f32 math."""
    del attention_mask
    pooled = jnp.take(params["embedding"], input_ids[:, 0], axis=0)

    def bn(x, p):
        return (x - p["mean"]) * jax.lax.rsqrt(p["var"] + EPS) * p["gamma"] + p["beta"]

    cat = bn(pooled, params["bn1"]) @ params["wc"] + params["bc"]
    sub = bn(pooled, params["bn2"]) @ params["ws"] + params["bs"]
    return cat, sub


if __name__ == "__main__":
    key = jax.random.PRNGKey(0)
    B, S = 2, 8
    vocab_size = 100
    num_categories, num_subcategories = 8, 16

    k_params, k_ids = jax.random.split(key)
    params = make_params(k_params, vocab_size, num_categories, num_subcategories)
    prep = prepare_inference_params(params, num_categories, num_subcategories)

    input_ids = jax.random.randint(k_ids, (B, S), 0, vocab_size, dtype=jnp.int32)
    attention_mask = jnp.ones((B, S), dtype=jnp.int32)

    cat_out, sub_out = forward(prep, input_ids, attention_mask)
    jax.block_until_ready((cat_out, sub_out))

    # sanity check against pure-JAX (unfolded, f32) reference; tolerance
    # loosened for the bf16 weight / MXU-operand path.
    ref_cat, ref_sub = reference_forward(params, input_ids, attention_mask)
    assert cat_out.shape == (B, num_categories)
    assert sub_out.shape == (B, num_subcategories)
    assert jnp.allclose(cat_out, ref_cat, atol=2e-3, rtol=2e-2)
    assert jnp.allclose(sub_out, ref_sub, atol=2e-3, rtol=2e-2)

    print("KERNEL_OK")
</pallas_src>

<mosaic_0001>
module attributes {stable_mosaic.version = 11 : i64} {
  func.func @_head_kernel(%arg0: i32, %arg1: memref<8xi32, #tpu.memory_space<smem>>, %arg2: memref<100x768xf32, #tpu.memory_space<any>>, %arg3: memref<768x128xbf16, #tpu.memory_space<vmem>>, %arg4: memref<1x128xf32, #tpu.memory_space<vmem>>, %arg5: memref<8x128xf32, #tpu.memory_space<vmem>>, %arg6: memref<8x768xf32, #tpu.memory_space<vmem>>, %arg7: memref<!tpu.dma_semaphore, #tpu.memory_space<semaphore_mem>>) attributes {dimension_semantics = [#tpu.dimension_semantics<parallel>], iteration_bounds = array<i64: 1>, scalar_prefetch = 1 : i64, scratch_operands = 2 : i64, tpu.core_type = #tpu.core_type<tc>, window_params = [{}, {pipeline_mode = #tpu.pipeline_mode<synchronous>, transform_indices = @transform_1, window_bounds = array<i64: 768, 128>}, {pipeline_mode = #tpu.pipeline_mode<synchronous>, transform_indices = @transform_2, window_bounds = array<i64: 1, 128>}, {transform_indices = @transform_3, window_bounds = array<i64: 8, 128>}]} {
    %c8_i32 = arith.constant 8 : i32
    %0 = arith.muli %arg0, %c8_i32 : i32
    %c0_i32 = arith.constant 0 : i32
    %c8_i32_0 = arith.constant 8 : i32
    %1 = arith.addi %c0_i32, %c8_i32_0 : i32
    %c1_i32 = arith.constant 1 : i32
    scf.for %arg8 = %c0_i32 to %1 step %c1_i32  : i32 {
      %11 = arith.addi %0, %arg8 : i32
      %12 = arith.index_cast %11 : i32 to index
      %13 = memref.load %arg1[%12] : memref<8xi32, #tpu.memory_space<smem>>
      %c0_i32_13 = arith.constant 0 : i32
      %14 = tpu.memref_slice %arg2[%13, %c0_i32_13] : memref<100x768xf32, #tpu.memory_space<any>> -> memref<1x768xf32, #tpu.memory_space<any>>
      %15 = tpu.memref_squeeze %14 : memref<1x768xf32, #tpu.memory_space<any>> -> memref<768xf32, #tpu.memory_space<any>>
      %c0_i32_14 = arith.constant 0 : i32
      %16 = tpu.memref_slice %arg6[%arg8, %c0_i32_14] : memref<8x768xf32, #tpu.memory_space<vmem>> -> memref<1x768xf32, #tpu.memory_space<vmem>>
      %17 = tpu.memref_squeeze %16 : memref<1x768xf32, #tpu.memory_space<vmem>> -> memref<768xf32, #tpu.memory_space<vmem>>
      tpu.enqueue_dma source(%15 : memref<768xf32, #tpu.memory_space<any>>) target(%17 : memref<768xf32, #tpu.memory_space<vmem>>) target_semaphore(%arg7 : memref<!tpu.dma_semaphore, #tpu.memory_space<semaphore_mem>>)
    }
    %c8_i32_1 = arith.constant 8 : i32
    %c0_i32_2 = arith.constant 0 : i32
    %c8_i32_3 = arith.constant 8 : i32
    %2 = arith.addi %c0_i32_2, %c8_i32_3 : i32
    %c1_i32_4 = arith.constant 1 : i32
    scf.for %arg8 = %c0_i32_2 to %2 step %c1_i32_4  : i32 {
      %c0_i32_13 = arith.constant 0 : i32
      %c0_i32_14 = arith.constant 0 : i32
      %11 = tpu.memref_slice %arg2[%c0_i32_13, %c0_i32_14] : memref<100x768xf32, #tpu.memory_space<any>> -> memref<1x768xf32, #tpu.memory_space<any>>
      %12 = tpu.memref_squeeze %11 : memref<1x768xf32, #tpu.memory_space<any>> -> memref<768xf32, #tpu.memory_space<any>>
      %c0_i32_15 = arith.constant 0 : i32
      %13 = tpu.memref_slice %arg6[%arg8, %c0_i32_15] : memref<8x768xf32, #tpu.memory_space<vmem>> -> memref<1x768xf32, #tpu.memory_space<vmem>>
      %14 = tpu.memref_squeeze %13 : memref<1x768xf32, #tpu.memory_space<vmem>> -> memref<768xf32, #tpu.memory_space<vmem>>
      tpu.wait_dma2 semaphore(%arg7 : memref<!tpu.dma_semaphore, #tpu.memory_space<semaphore_mem>>) src(%12 : memref<768xf32, #tpu.memory_space<any>>) dst(%14 : memref<768xf32, #tpu.memory_space<vmem>>)
    }
    %c8_i32_5 = arith.constant 8 : i32
    %c0 = arith.constant 0 : index
    %c0_6 = arith.constant 0 : index
    %3 = vector.load %arg6[%c0, %c0_6] : memref<8x768xf32, #tpu.memory_space<vmem>>, vector<8x768xf32>
    %4 = arith.truncf %3 : vector<8x768xf32> to vector<8x768xbf16>
    %c0_7 = arith.constant 0 : index
    %c0_8 = arith.constant 0 : index
    %5 = vector.load %arg3[%c0_7, %c0_8] : memref<768x128xbf16, #tpu.memory_space<vmem>>, vector<768x128xbf16>
    %cst = arith.constant dense<0.000000e+00> : vector<8x128xf32>
    %6 = tpu.matmul %4, %5, %cst {dimension_numbers = #tpu.dot_dimension_numbers<[1], [0], [0], [1], [0, 0, 1, 1], [], []>} : vector<8x768xbf16>, vector<768x128xbf16>, vector<8x128xf32> -> vector<8x128xf32>
    %c0_9 = arith.constant 0 : index
    %c0_10 = arith.constant 0 : index
    %7 = vector.load %arg4[%c0_9, %c0_10] : memref<1x128xf32, #tpu.memory_space<vmem>>, vector<1x128xf32>
    %8 = vector.broadcast %7 : vector<1x128xf32> to vector<8x128xf32>
    %9 = arith.addf %6, %8 : vector<8x128xf32>
    %c0_11 = arith.constant 0 : index
    %c0_12 = arith.constant 0 : index
    %10 = vector.load %arg5[%c0_11, %c0_12] : memref<8x128xf32, #tpu.memory_space<vmem>>, vector<8x128xf32>
    tpu.vector_store %arg5[%c0_11, %c0_12], %9 {strides = array<i32>} : memref<8x128xf32, #tpu.memory_space<vmem>>, vector<8x128xf32>,
    return
  }
  func.func @transform_1(%arg0: i32, %arg1: memref<8xi32, #tpu.memory_space<smem>>) -> (i32, i32) {
    %c0_i32 = arith.constant 0 : i32
    %c0_i32_0 = arith.constant 0 : i32
    %c0_i32_1 = arith.constant 0 : i32
    return %c0_i32, %c0_i32_0 : i32, i32
  }
  func.func @transform_2(%arg0: i32, %arg1: memref<8xi32, #tpu.memory_space<smem>>) -> (i32, i32) {
    %c0_i32 = arith.constant 0 : i32
    %c0_i32_0 = arith.constant 0 : i32
    %c0_i32_1 = arith.constant 0 : i32
    return %c0_i32, %c0_i32_0 : i32, i32
  }
  func.func @transform_3(%arg0: i32, %arg1: memref<8xi32, #tpu.memory_space<smem>>) -> (i32, i32) {
    %c0_i32 = arith.constant 0 : i32
    %c0_i32_0 = arith.constant 0 : i32
    return %arg0, %c0_i32 : i32, i32
  }
}

</mosaic_0001>

<bundles_post_ra>
// kernel: tpu_custom_call.1
= control target key start
LH: loop header
LB: loop body
LE: loop exit
PB: predicated region body
PF: predicated region fallthrough
CT: control target
= control target key end

     0   :  { %s910_s15 = smov [#allocation5]   ;;  %s975_s0 = inlined_call_operand.hbm [shape: s32[8], index: 0, kind: input, shape index: {}]   ;;  %s976_s1 = inlined_call_operand.hbm [shape: f32[100,768], index: 1, kind: input, shape index: {}]   ;;  %s977_s2 = inlined_call_operand.hbm [shape: bf16[768,128], index: 2, kind: input, shape index: {}]   ;;  %s978_s3 = inlined_call_operand.vmem [shape: f32[1,128], index: 3, kind: input, shape index: {}]   ;;  %s979_s4 = inlined_call_operand.hbm [shape: f32[8,128], index: 4, kind: output, shape index: {}]  }
   0x1   :  { %10 = dma.hbm_to_smem %s975_s0, 16, %s910_s15, [#allocation4] }
   0x2   :  { %894 = dma.done.wait [#allocation4], 16 }
   0x3   :  { %895 = vsyncadd [#allocation4], 4294967280 }
   0x4   :  { %12 = sfence }
   0x5   :  { %13 = vsyncpa [#allocation7], 0 }
   0x6   :  { %14 = vsyncpa [#allocation8], 0  ;;  %s911_s18 = smov [#allocation6]  }
   0x7   :  { %s20_s19 = sshll.u32 %s911_s18, 4  ;;  %s21_s19 = int_to_ptr.vmem [resolvable:$true] %s20_s19 }
   0x8   :  { %s832_s20 = scalar_lea.vmem %s21_s19, 6144  ;;  %p837_p1 = scmp.lt.s32.totalorder %s21_s19, %s21_s19 }
   0x9   :  { %p833_p0 = scmp.ne.s32.totalorder %s21_s19, %s832_s20  ;;  %p838_p2 = scmp.lt.s32.totalorder %s832_s20, %s832_s20 }
   0xb   :  { %p839_p3 = por %p838_p2, %p837_p1 }
   0xd   :  { %p840_p4 = pnand %p839_p3, %p833_p0 }
   0xf   :  { %843 = shalt.err (!%p840_p4)
}
  0x10   :  { %s912_s21 = smov 64   ;;  %s913_s22 = smov 4  }
  0x11   :  { %26 = dma.hbm_to_vmem [thread:$0]  %s977_s2, 6144, %s21_s19, [#allocation7], %s912_s21, %s912_s21, %s913_s22  }
  0x12   :  { %896 = dma.done.wait [#allocation7], 6144  }
  0x13   :  { %897 = vsyncadd [#allocation7], 4294961152  ;;  %s949_s0 = smov 0  }
  0x14 LB: > { %s41_s25 = sld [smem:[#allocation5 + %s904_s0]]  ;;  %s48_s26 = sshrl.u32 %s904_s0, 3  ;;  %s904_s0 = sphi %s949_s0, %s39_s0  }
  0x15   : > { %s49_s27 = sand.u32 7, %s904_s0   ;;  %s50_s28 = smul.u32 48, %s48_s26 }
  0x16   : > { %s846_s16 = scalar_lea.hbm %s976_s1, 9984 }
  0x17   : > { %s51_s29 = sadd.s32 %s50_s28, %s49_s27 }
  0x18   : > { %s52_s30 = scalar_lea.vmem [#allocation2], %s51_s29 }
  0x19   : > { %s54_s5 = sshll.u32 %s52_s30, 4  ;;  %s55_s5 = int_to_ptr.vmem [resolvable:$true] %s54_s5 }
  0x1a   : > { %s42_s2 = sshrl.u32 %s41_s25, 3  ;;  %s43_s6 = sand.u32 7, %s41_s25  }
  0x1b   : > { %s44_s7 = smul.u32 48, %s42_s2 }
  0x1d   : > { %s45_s8 = sadd.s32 %s44_s7, %s43_s6 }
  0x1e   : > { %s628_s9 = sshll.u32 %s45_s8, 4 }
  0x1f   : > { %s47_s12 = scalar_lea.hbm %s976_s1, %s628_s9 }
  0x20   : > { %s844_s13 = scalar_lea.hbm %s47_s12, 96  ;;  %p847_p6 = scmp.lt.s32.totalorder %s47_s12, %s976_s1 }
  0x21   : > { %p845_p5 = scmp.ne.s32.totalorder %s47_s12, %s844_s13  ;;  %p848_p7 = scmp.lt.s32.totalorder %s846_s16, %s844_s13 }
  0x23   : > { %p849_p8 = por %p848_p7, %p847_p6 }
  0x25   : > { %p850_p9 = pnand %p849_p8, %p845_p5 }
  0x27   : > { %853 = shalt.err (!%p850_p9)  }
  0x28   : > { %s854_s19 = scalar_lea.vmem %s55_s5, 96  ;;  %s914_s20 = smov [#allocation2]  }
  0x29   : > { %p855_p10 = scmp.ne.s32.totalorder %s55_s5, %s854_s19  ;;  %s856_s21 = sshll.u32 %s914_s20, 4  ;;  %s857_s21 = int_to_ptr.vmem [resolvable:$false] %s856_s21 }
  0x2a   : > { %s858_s22 = scalar_lea.vmem %s857_s21, 768  ;;  %p859_p11 = scmp.lt.s32.totalorder %s55_s5, %s857_s21 }
  0x2b   : > { %p860_p12 = scmp.lt.s32.totalorder %s858_s22, %s854_s19 }
  0x2d   : > { %p861_p13 = por %p860_p12, %p859_p11 }
  0x2f   : > { %p862_p0 = pnand %p861_p13, %p855_p10 }
  0x31   : > { %865 = shalt.err (!%p862_p0)  }
  0x32   : > { %s915_s23 = smov 128   ;;  %s916_s24 = smov 1  }
  0x33   : > { %57 = dma.hbm_to_vmem [thread:$0]  %s47_s12, 96, %s55_s5, [#allocation3], %s915_s23, %s915_s23, %s916_s24 }
  0x34   : > { %s39_s0 = sadd.s32 1, %s904_s0  }
  0x35   : > { %p36_p1 = scmp.ge.s32.totalorder %s39_s0, 8  }
  0x36   :  { %s906_s25 = smov (%p36_p1), 0  }
  0x37   :  { %38 = sbr.rel (!%p36_p1) target bundleno = 20 (0x14), region = 48 }
  0x3c LB: > { %898 = dma.done.wait [#allocation3], 96  ;;  %s908_s25 = sphi %s906_s25, %s63_s25  }
  0x3d   : > { %899 = vsyncadd [#allocation3], 4294967200  ;;  %s63_s25 = sadd.s32 1, %s908_s25  }
  0x3e   : > { %p60_p2 = scmp.ge.s32.totalorder %s63_s25, 8  }
  0x3f   :  { %v768_v0 = vld [vmem:[#allocation6 + $0x78] sm:$0xff] (%p60_p2)   ;;  %v772_v4 = vld [vmem:[#allocation6 + $0x70] sm:$0xff] (%p60_p2)   ;;  %v776_v8 = vld [vmem:[#allocation6 + $0x68] sm:$0xff] (%p60_p2)   ;;  %s917_s26 = smov (%p60_p2), [#allocation9]  }
  0x40   :  { %62 = sbr.rel (!%p60_p2) target bundleno = 60 (0x3c), region = 59  ;;  %v769_v1 = vld [vmem:[#allocation6 + $0x38] sm:$0xff] (%p60_p2)   ;;  %679 = vmatprep.subr.bf16.mxu0 (%p60_p2), %v768_v0  ;;  %v773_v5 = vld [vmem:[#allocation6 + $0x30] sm:$0xff] (%p60_p2)   ;;  %v777_v9 = vld [vmem:[#allocation6 + $0x28] sm:$0xff] (%p60_p2)   ;;  %s596_s27 = sshll.u32 (%p60_p2), %s917_s26, 4  ;;  %s597_s27 = int_to_ptr.vmem [resolvable:$true] %s596_s27 }
  0x41   :  { %v770_v2 = vld [vmem:[#allocation6 + $0xf8] sm:$0xff] (%p60_p2)   ;;  %680 = vmatpush3.bf16.msra.mxu0 (%p60_p2), %v769_v1  ;;  %v774_v6 = vld [vmem:[#allocation6 + $0xf0] sm:$0xff] (%p60_p2)   ;;  %v778_v10 = vld [vmem:[#allocation6 + $0xe8] sm:$0xff] (%p60_p2)   ;;  %s866_s28 = scalar_lea.vmem (%p60_p2), %s597_s27, 128  ;;  %p871_p4 = scmp.lt.s32.totalorder (%p60_p2), %s597_s27, %s597_s27 }
  0x42   :  { %v771_v3 = vld [vmem:[#allocation6 + $0xb8] sm:$0xff] (%p60_p2)   ;;  %701 = vmatprep.subr.bf16.mxu1 (%p60_p2), %v770_v2  ;;  %681 = vmatprep.subr.bf16.mxu0 (%p60_p2), %v772_v4  ;;  %v775_v7 = vld [vmem:[#allocation6 + $0xb0] sm:$0xff] (%p60_p2)   ;;  %v779_v11 = vld [vmem:[#allocation6 + $0xa8] sm:$0xff] (%p60_p2)   ;;  %p867_p3 = scmp.ne.s32.totalorder (%p60_p2), %s597_s27, %s866_s28  ;;  %p872_p5 = scmp.lt.s32.totalorder (%p60_p2), %s866_s28, %s866_s28 }
  0x43   :  { %702 = vmatpush3.bf16.msra.mxu1 (%p60_p2), %v771_v3  ;;  %v780_v12 = vld [vmem:[#allocation6 + $0x60] sm:$0xff] (%p60_p2)   ;;  %v784_v16 = vld [vmem:[#allocation6 + $0x58] sm:$0xff] (%p60_p2)   ;;  %v788_v20 = vld [vmem:[#allocation6 + $0x50] sm:$0xff] (%p60_p2)  }
  0x44   :  { %703 = vmatprep.subr.bf16.mxu1 (%p60_p2), %v774_v6  ;;  %v781_v13 = vld [vmem:[#allocation6 + $0x20] sm:$0xff] (%p60_p2)   ;;  %v785_v17 = vld [vmem:[#allocation6 + $0x18] sm:$0xff] (%p60_p2)   ;;  %v789_v21 = vld [vmem:[#allocation6 + $0x10] sm:$0xff] (%p60_p2)   ;;  %p873_p6 = por (%p60_p2), %p872_p5, %p871_p4 }
  0x45   :  { %682 = vmatpush3.bf16.msra.mxu0 %v773_v5  ;;  %v782_v14 = vld [vmem:[#allocation6 + $0xe0] sm:$0xff]   ;;  %v786_v18 = vld [vmem:[#allocation6 + $0xd8] sm:$0xff]   ;;  %v790_v22 = vld [vmem:[#allocation6 + $0xd0] sm:$0xff]  }
  0x46   :  { %683 = vmatprep.subr.bf16.mxu0 %v776_v8  ;;  %v783_v15 = vld [vmem:[#allocation6 + $0xa0] sm:$0xff]   ;;  %v787_v19 = vld [vmem:[#allocation6 + $0x98] sm:$0xff]   ;;  %v791_v23 = vld [vmem:[#allocation6 + $0x90] sm:$0xff]   ;;  %p874_p7 = pnand %p873_p6, %p867_p3 }
  0x47   :  { %704 = vmatpush3.bf16.msra.mxu1 %v775_v7  ;;  %v792_v24 = vld [vmem:[#allocation6 + $0x48] sm:$0xff]   ;;  %v796_v28 = vld [vmem:[#allocation6 + $0x40] sm:$0xff]   ;;  %v67_v31 = vld [vmem:[#allocation2 + $0x8] sm:$0xff] }
  0x48   :  { %705 = vmatprep.subr.bf16.mxu1 %v778_v10  ;;  %v793_v25 = vld [vmem:[#allocation6 + $0x8] sm:$0xff]   ;;  %v797_v29 = vld [vmem:[#allocation6] sm:$0xff]   ;;  %v73_v32 = vpack.c.bf16 %v67_v31, %v67_v31  ;;  %v66_v34 = vld [vmem:[#allocation2] sm:$0xff] }
  0x49   :  { %684 = vmatpush3.bf16.msra.mxu0 %v777_v9  ;;  %v794_v26 = vld [vmem:[#allocation6 + $0xc8] sm:$0xff]   ;;  %v798_v30 = vld [vmem:[#allocation6 + $0xc0] sm:$0xff]   ;;  %v72_v35 = vpack.c.bf16 %v66_v34, %v66_v34  ;;  %v800_v36 = vld [vmem:[#allocation6 + $0x178] sm:$0xff]  }
  0x4a   :  { %685 = vmatprep.subr.bf16.mxu0 %v780_v12  ;;  %v795_v27 = vld [vmem:[#allocation6 + $0x88] sm:$0xff]   ;;  %v799_v33 = vld [vmem:[#allocation6 + $0x80] sm:$0xff]   ;;  %501 = vmatprep.mubr.bf16.mxu0 %v73_v32  ;;  %v801_v39 = vld [vmem:[#allocation6 + $0x138] sm:$0xff]  }
  0x4b   :  { %706 = vmatpush3.bf16.msra.mxu1 %v779_v11  ;;  %v69_v37 = vld [vmem:[#allocation2 + $0x18] sm:$0xff]  ;;  %v68_v40 = vld [vmem:[#allocation2 + $0x10] sm:$0xff]  ;;  %v802_v42 = vld [vmem:[#allocation6 + $0x170] sm:$0xff]  }
  0x4c   :  { %707 = vmatprep.subr.bf16.mxu1 %v782_v14  ;;  %v75_v38 = vpack.c.bf16 %v69_v37, %v69_v37  ;;  %v74_v41 = vpack.c.bf16 %v68_v40, %v68_v40  ;;  %v803_v43 = vld [vmem:[#allocation6 + $0x130] sm:$0xff]   ;;  %v804_v44 = vld [vmem:[#allocation6 + $0x168] sm:$0xff]   ;;  %v806_v46 = vld [vmem:[#allocation6 + $0x160] sm:$0xff]  }
  0x4d   :  { %686 = vmatpush3.bf16.msra.mxu0 %v781_v13  ;;  %v805_v45 = vld [vmem:[#allocation6 + $0x128] sm:$0xff]   ;;  %v807_v47 = vld [vmem:[#allocation6 + $0x120] sm:$0xff]   ;;  %v808_v48 = vld [vmem:[#allocation6 + $0x158] sm:$0xff]  }
  0x4e   :  { %687 = vmatprep.subr.bf16.mxu0 %v784_v16  ;;  %541 = vmatprep.mubr.bf16.mxu1 %v75_v38  ;;  %v809_v49 = vld [vmem:[#allocation6 + $0x118] sm:$0xff]   ;;  %v810_v50 = vld [vmem:[#allocation6 + $0x150] sm:$0xff]   ;;  %v812_v54 = vld [vmem:[#allocation6 + $0x148] sm:$0xff]  }
  0x4f   :  { %708 = vmatpush3.bf16.msra.mxu1 %v783_v15  ;;  %v71_v51 = vld [vmem:[#allocation2 + $0x28] sm:$0xff]  ;;  %v811_v53 = vld [vmem:[#allocation6 + $0x110] sm:$0xff]   ;;  %v813_v55 = vld [vmem:[#allocation6 + $0x108] sm:$0xff]  }
  0x50   :  { %709 = vmatprep.subr.bf16.mxu1 %v786_v18  ;;  %v77_v52 = vpack.c.bf16 %v71_v51, %v71_v51  ;;  %v814_v56 = vld [vmem:[#allocation6 + $0x140] sm:$0xff]   ;;  %v70_v58 = vld [vmem:[#allocation2 + $0x20] sm:$0xff] }
  0x51   :  { %688 = vmatpush3.bf16.msra.mxu0 %v785_v17  ;;  %v815_v57 = vld [vmem:[#allocation6 + $0x100] sm:$0xff]   ;;  %v76_v59 = vpack.c.bf16 %v70_v58, %v70_v58  ;;  %v629_v5 = vld [vmem:[%s978_s3] ss:$0 sm:$0xff] }
  0x52   :  { %689 = vmatprep.subr.bf16.mxu0 %v788_v20 }
  0x53   :  { %710 = vmatpush3.bf16.msra.mxu1 %v787_v19 }
  0x54   :  { %711 = vmatprep.subr.bf16.mxu1 %v790_v22 }
  0x55   :  { %690 = vmatpush3.bf16.msra.mxu0 %v789_v21 }
  0x56   :  { %691 = vmatprep.subr.bf16.mxu0 %v792_v24 }
  0x57   :  { %712 = vmatpush3.bf16.msra.mxu1 %v791_v23 }
  0x58   :  { %713 = vmatprep.subr.bf16.mxu1 %v794_v26 }
  0x59   :  { %692 = vmatpush3.bf16.msra.mxu0 %v793_v25 }
  0x5a   :  { %693 = vmatprep.subr.bf16.mxu0 %v796_v28 }
  0x5b   :  { %714 = vmatpush3.bf16.msra.mxu1 %v795_v27 }
  0x5c   :  { %715 = vmatprep.subr.bf16.mxu1 %v798_v30 }
  0x5d   :  { %694 = vmatpush3.bf16.msra.mxu0 %v797_v29 }
  0x5e   :  { %723 = vmatprep.subr.bf16.mxu0 %v800_v36 }
  0x5f   :  { %716 = vmatpush3.bf16.msra.mxu1 %v799_v33 }
  0x60   :  { %502 = vmatmul.mubr.bf16.vlgmr.msra.gmra.mxu0 %v72_v35 }
  0x61   :  { %724 = vmatpush3.bf16.msra.mxu0 %v801_v39  ;;  %581 = vmatprep.mubr.bf16.mxu0 %v77_v52 }
  0x62   :  { %542 = vmatmul.mubr.bf16.vlgmr.msra.gmra.mxu1 %v74_v41  ;;  %725 = vmatprep.subr.bf16.mxu0 %v802_v42 }
  0x65   :  { %726 = vmatpush3.bf16.msra.mxu0 %v803_v43 }
  0x66   :  { %727 = vmatprep.subr.bf16.mxu0 %v804_v44 }
  0x69   :  { %728 = vmatpush3.bf16.msra.mxu0 %v805_v45 }
  0x6a   :  { %729 = vmatprep.subr.bf16.mxu0 %v806_v46 }
  0x6d   :  { %730 = vmatpush3.bf16.msra.mxu0 %v807_v47 }
  0x6e   :  { %731 = vmatprep.subr.bf16.mxu0 %v808_v48 }
  0x71   :  { %732 = vmatpush3.bf16.msra.mxu0 %v809_v49 }
  0x72   :  { %733 = vmatprep.subr.bf16.mxu0 %v810_v50 }
  0x75   :  { %734 = vmatpush3.bf16.msra.mxu0 %v811_v53 }
  0x76   :  { %735 = vmatprep.subr.bf16.mxu0 %v812_v54 }
  0x79   :  { %736 = vmatpush3.bf16.msra.mxu0 %v813_v55 }
  0x7a   :  { %737 = vmatprep.subr.bf16.mxu0 %v814_v56 }
  0x7d   :  { %738 = vmatpush3.bf16.msra.mxu0 %v815_v57 }
  0x80   :  { %582 = vmatmul.mubr.bf16.vlgmr.msra.gmra.mxu0 %v76_v59 }
 0x120   :  { %v695_v60 = vpop.f32.mrf.mxu0 }
 0x122   :  { %v696_v61 = vpop.f32.mrf.mxu0  ;;  %v717_v62 = vpop.f32.mrf.mxu1 }
 0x123   :  { %v697_v4 = vadd.f32 %v696_v61, %v695_v60 }
 0x124   :  { %v698_v63 = vpop.f32.mrf.mxu0  ;;  %v718_v0 = vpop.f32.mrf.mxu1 }
 0x125   :  { %v504_v6 = vadd.f32 %v697_v4, %v629_v5  ;;  %v719_v7 = vadd.f32 %v718_v0, %v717_v62 }
 0x126   :  { %v699_v1 = vpop.f32.mrf.mxu0  ;;  %v720_v2 = vpop.f32.mrf.mxu1 }
 0x127   :  { %v544_v10 = vadd.f32 %v719_v7, %v504_v6 }
 0x128   :  { %v721_v3 = vpop.f32.mrf.mxu1 }
 0x140   :  { %v739_v8 = vpop.f32.mrf.mxu0 }
 0x142   :  { %v740_v9 = vpop.f32.mrf.mxu0 }
 0x143   :  { %v741_v11 = vadd.f32 %v740_v9, %v739_v8 }
 0x144   :  { %v742_v12 = vpop.f32.mrf.mxu0 }
 0x145   :  { %v584_v13 = vadd.f32 %v741_v11, %v544_v10 }
 0x146   :  { %v743_v14 = vpop.f32.mrf.mxu0 }
 0x147   :  { %589 = vst [vmem:[#allocation9] sm:$0xff] %v584_v13 }
 0x148   :  { %877 = shalt.err (!%p874_p7)
}
 0x149   :  { %599 = dma.vmem_to_hbm [thread:$0]  %s597_s27, 128, %s979_s4, [#allocation8]  }
 0x14a   :  { %900 = dma.done.wait [#allocation8], 128  }
 0x14b   :  { %901 = vsyncadd [#allocation8], 4294967168 }
 0x14c   :  { %603 = vsyncpa [#allocation7], 1 }
 0x14d   :  { %604 = vsyncpa [#allocation8], 1 }
 0x14e   :  { %605 = vsyncmov [#allocation3] }
 0x151   :  { %s606_s30 = vpop.sfrf %605 }
 0x152   :  { %p678_p8 = scmp.ne.s32.totalorder %s606_s30, 0 }
 0x154   :  { %610 = shalt.err (%p678_p8)  }

</bundles_post_ra>
